<compile_context>
chip_gen: v7x
topology: tpu7x:2x2x1
jax: 0.10.0
libtpu: 0.0.40
codegen_flags: <defaults>
</compile_context>

<pallas_src>
import functools

import jax
import jax.numpy as jnp
from jax.experimental import pallas as pl
from jax.experimental.pallas import tpu as pltpu

HIDDEN_SIZE = 32


def _round_up(v, m):
    return ((v + m - 1) // m) * m


def _actor_kernel(ma_ref, x_ref, w1_ref, w2_ref, w3_ref,
                  b1_ref, b2_ref, b3_ref, o_ref):
    """Feature-major fused MLP: all activations are (features, batch_tile)."""
    max_action = ma_ref[0]                                    # f32 scalar (SMEM)

    # f32 -> bf16 cast happens on-chip (VPU), hidden under the input DMA.
    x = x_ref[...].astype(jnp.bfloat16)                       # (D_in, TILE_B)

    # fc1 + ReLU:  (H, D_in) @ (D_in, TILE_B) -> (H, TILE_B), f32 accumulate.
    h1 = jnp.dot(w1_ref[...], x,
                 preferred_element_type=jnp.float32) + b1_ref[...]
    h1 = jnp.maximum(h1, 0.0)

    # fc2 + ReLU
    h2 = jnp.dot(w2_ref[...], h1.astype(jnp.bfloat16),
                 preferred_element_type=jnp.float32) + b2_ref[...]
    h2 = jnp.maximum(h2, 0.0)

    # out + max_action * tanh   ->  (A, TILE_B), lane-dense store
    sv = jnp.dot(w3_ref[...], h2.astype(jnp.bfloat16),
                 preferred_element_type=jnp.float32) + b3_ref[...]
    o_ref[...] = (max_action * jnp.tanh(sv)).astype(o_ref.dtype)


def _choose_tile_b(batch, tile_b):
    """Batch-tile width (the lane dimension of the feature-major tiles)."""
    if batch <= 256:
        return batch                    # single block; block dims == array dims
    half = -(-batch // 2)
    if half <= tile_b:
        return _round_up(half, 128)     # exactly 2 blocks -> both v7x TCs busy
    return tile_b                       # large batch: fat fixed-size tiles


@functools.partial(jax.jit, static_argnames=("tile_b",))
def actor_forward(x, params, max_action, *, tile_b=2048):
    """Fused Actor forward.

    x:          (B, input_dim) float32
    params:     dict with w1 (H,D_in), b1 (H,1), w2 (H,H), b2 (H,1),
                w3 (A,H), b3 (A,1)   (PyTorch nn.Linear orientation)
    max_action: runtime scalar (no recompile when it changes)
    returns:    (B, A) float32
    """
    w1, b1 = params["w1"], params["b1"]
    w2, b2 = params["w2"], params["b2"]
    w3, b3 = params["w3"], params["b3"]

    B, D_in = x.shape
    H = w1.shape[0]
    A = w3.shape[0]

    tile_b = _round_up(tile_b, 128)
    TILE_B = _choose_tile_b(B, tile_b)
    nb = -(-B // TILE_B)

    # Feature-major activations: batch on the 128-lane axis.  No padding, no
    # host-side dtype cast of x.
    x_t = x.T                                                 # (D_in, B) f32

    w1_bf = w1.astype(jnp.bfloat16)
    w2_bf = w2.astype(jnp.bfloat16)
    w3_bf = w3.astype(jnp.bfloat16)

    ma = jnp.reshape(jnp.asarray(max_action, jnp.float32), (1,))

    # Constant block index -> weights / biases stay VMEM-resident across the grid.
    resident = lambda arr: pl.BlockSpec(arr.shape, lambda i: (0, 0))

    out_t = pl.pallas_call(
        _actor_kernel,
        out_shape=jax.ShapeDtypeStruct((A, B), jnp.float32),
        grid=(nb,),
        in_specs=[
            pl.BlockSpec(memory_space=pltpu.MemorySpace.SMEM),   # max_action
            pl.BlockSpec((D_in, TILE_B), lambda i: (0, i)),      # x tile (f32)
            resident(w1_bf),
            resident(w2_bf),
            resident(w3_bf),
            resident(b1),
            resident(b2),
            resident(b3),
        ],
        out_specs=pl.BlockSpec((A, TILE_B), lambda i: (0, i)),
        compiler_params=pltpu.CompilerParams(
            dimension_semantics=("parallel",),                   # megacore on v7x
        ),
    )(ma, x_t, w1_bf, w2_bf, w3_bf, b1, b2, b3)

    return out_t.T                                               # (B, A)


def init_actor_params(key, input_dim, action_dim, hidden=HIDDEN_SIZE):
    """Deterministic synthetic init matching PyTorch nn.Linear (weight = (out,in))."""
    ks = jax.random.split(key, 6)

    def lin(kw, kb, fan_in, fan_out):
        bound = 1.0 / jnp.sqrt(fan_in)
        w = jax.random.uniform(kw, (fan_out, fan_in), jnp.float32, -bound, bound)
        b = jax.random.uniform(kb, (fan_out, 1), jnp.float32, -bound, bound)
        return w, b

    w1, b1 = lin(ks[0], ks[1], input_dim, hidden)
    w2, b2 = lin(ks[2], ks[3], hidden, hidden)
    w3, b3 = lin(ks[4], ks[5], hidden, action_dim)
    return {"w1": w1, "b1": b1, "w2": w2, "b2": b2, "w3": w3, "b3": b3}


def _reference(x, params, max_action):
    """Pure-JAX reference using the same bf16-operand / f32-accumulate math."""
    xb = x.astype(jnp.bfloat16)
    w1 = params["w1"].astype(jnp.bfloat16)
    w2 = params["w2"].astype(jnp.bfloat16)
    w3 = params["w3"].astype(jnp.bfloat16)
    h1 = jnp.maximum(
        jnp.dot(xb, w1.T, preferred_element_type=jnp.float32)
        + params["b1"].reshape(1, -1), 0.0)
    h2 = jnp.maximum(
        jnp.dot(h1.astype(jnp.bfloat16), w2.T, preferred_element_type=jnp.float32)
        + params["b2"].reshape(1, -1), 0.0)
    sv = (jnp.dot(h2.astype(jnp.bfloat16), w3.T, preferred_element_type=jnp.float32)
          + params["b3"].reshape(1, -1))
    return max_action * jnp.tanh(sv)


if __name__ == "__main__":
    key = jax.random.PRNGKey(0)
    k_x, k_p, k_big = jax.random.split(key, 3)

    input_dim = 16
    action_dim = 4
    max_action = 2.0
    params = init_actor_params(k_p, input_dim, action_dim)

    # Small-batch check: single block (block dims == full array dims).
    batch = 8
    x = jax.random.normal(k_x, (batch, input_dim), jnp.float32)
    out = jax.block_until_ready(actor_forward(x, params, max_action))
    ref = _reference(x, params, max_action)
    assert out.shape == (batch, action_dim)
    assert jnp.allclose(out, ref, atol=2e-2, rtol=2e-2)

    # Multi-tile check: 2 lane-dense batch tiles, ragged last block, no padding.
    big_batch = 600
    x_big = jax.random.normal(k_big, (big_batch, input_dim), jnp.float32)
    out_big = jax.block_until_ready(actor_forward(x_big, params, max_action))
    ref_big = _reference(x_big, params, max_action)
    assert out_big.shape == (big_batch, action_dim)
    assert jnp.allclose(out_big, ref_big, atol=2e-2, rtol=2e-2)

    print("KERNEL_OK")
</pallas_src>

<mosaic_0001>
module attributes {stable_mosaic.version = 11 : i64} {
  func.func @_actor_kernel(%arg0: i32, %arg1: memref<1xf32, #tpu.memory_space<smem>>, %arg2: memref<16x8xf32, #tpu.memory_space<vmem>>, %arg3: memref<32x16xbf16, #tpu.memory_space<vmem>>, %arg4: memref<32x32xbf16, #tpu.memory_space<vmem>>, %arg5: memref<4x32xbf16, #tpu.memory_space<vmem>>, %arg6: memref<32x1xf32, #tpu.memory_space<vmem>>, %arg7: memref<32x1xf32, #tpu.memory_space<vmem>>, %arg8: memref<4x1xf32, #tpu.memory_space<vmem>>, %arg9: memref<4x8xf32, #tpu.memory_space<vmem>>) attributes {dimension_semantics = [#tpu.dimension_semantics<parallel>], iteration_bounds = array<i64: 1>, scalar_prefetch = 0 : i64, scratch_operands = 0 : i64, tpu.core_type = #tpu.core_type<tc>, window_params = [{transform_indices = @transform_0, window_bounds = array<i64: 1>}, {transform_indices = @transform_1, window_bounds = array<i64: 16, 8>}, {pipeline_mode = #tpu.pipeline_mode<synchronous>, transform_indices = @transform_2, window_bounds = array<i64: 32, 16>}, {pipeline_mode = #tpu.pipeline_mode<synchronous>, transform_indices = @transform_3, window_bounds = array<i64: 32, 32>}, {pipeline_mode = #tpu.pipeline_mode<synchronous>, transform_indices = @transform_4, window_bounds = array<i64: 4, 32>}, {pipeline_mode = #tpu.pipeline_mode<synchronous>, transform_indices = @transform_5, window_bounds = array<i64: 32, 1>}, {pipeline_mode = #tpu.pipeline_mode<synchronous>, transform_indices = @transform_6, window_bounds = array<i64: 32, 1>}, {pipeline_mode = #tpu.pipeline_mode<synchronous>, transform_indices = @transform_7, window_bounds = array<i64: 4, 1>}, {transform_indices = @transform_8, window_bounds = array<i64: 4, 8>}]} {
    %c0 = arith.constant 0 : index
    %0 = memref.load %arg1[%c0] : memref<1xf32, #tpu.memory_space<smem>>
    %c0_0 = arith.constant 0 : index
    %c0_1 = arith.constant 0 : index
    %1 = vector.load %arg2[%c0_0, %c0_1] : memref<16x8xf32, #tpu.memory_space<vmem>>, vector<16x8xf32>
    %2 = arith.truncf %1 : vector<16x8xf32> to vector<16x8xbf16>
    %c0_2 = arith.constant 0 : index
    %c0_3 = arith.constant 0 : index
    %3 = vector.load %arg3[%c0_2, %c0_3] : memref<32x16xbf16, #tpu.memory_space<vmem>>, vector<32x16xbf16>
    %cst = arith.constant dense<0.000000e+00> : vector<32x8xf32>
    %4 = tpu.matmul %3, %2, %cst {dimension_numbers = #tpu.dot_dimension_numbers<[1], [0], [0], [1], [0, 0, 1, 1], [], []>} : vector<32x16xbf16>, vector<16x8xbf16>, vector<32x8xf32> -> vector<32x8xf32>
    %c0_4 = arith.constant 0 : index
    %c0_5 = arith.constant 0 : index
    %5 = vector.load %arg6[%c0_4, %c0_5] : memref<32x1xf32, #tpu.memory_space<vmem>>, vector<32x1xf32>
    %6 = vector.broadcast %5 : vector<32x1xf32> to vector<32x8xf32>
    %7 = arith.addf %4, %6 : vector<32x8xf32>
    %cst_6 = arith.constant 0.000000e+00 : f32
    %8 = vector.broadcast %cst_6 : f32 to vector<32x8xf32>
    %9 = arith.maximumf %7, %8 : vector<32x8xf32>
    %c0_7 = arith.constant 0 : index
    %c0_8 = arith.constant 0 : index
    %10 = vector.load %arg4[%c0_7, %c0_8] : memref<32x32xbf16, #tpu.memory_space<vmem>>, vector<32x32xbf16>
    %11 = arith.truncf %9 : vector<32x8xf32> to vector<32x8xbf16>
    %cst_9 = arith.constant dense<0.000000e+00> : vector<32x8xf32>
    %12 = tpu.matmul %10, %11, %cst_9 {dimension_numbers = #tpu.dot_dimension_numbers<[1], [0], [0], [1], [0, 0, 1, 1], [], []>} : vector<32x32xbf16>, vector<32x8xbf16>, vector<32x8xf32> -> vector<32x8xf32>
    %c0_10 = arith.constant 0 : index
    %c0_11 = arith.constant 0 : index
    %13 = vector.load %arg7[%c0_10, %c0_11] : memref<32x1xf32, #tpu.memory_space<vmem>>, vector<32x1xf32>
    %14 = vector.broadcast %13 : vector<32x1xf32> to vector<32x8xf32>
    %15 = arith.addf %12, %14 : vector<32x8xf32>
    %cst_12 = arith.constant 0.000000e+00 : f32
    %16 = vector.broadcast %cst_12 : f32 to vector<32x8xf32>
    %17 = arith.maximumf %15, %16 : vector<32x8xf32>
    %c0_13 = arith.constant 0 : index
    %c0_14 = arith.constant 0 : index
    %18 = vector.load %arg5[%c0_13, %c0_14] : memref<4x32xbf16, #tpu.memory_space<vmem>>, vector<4x32xbf16>
    %19 = arith.truncf %17 : vector<32x8xf32> to vector<32x8xbf16>
    %cst_15 = arith.constant dense<0.000000e+00> : vector<4x8xf32>
    %20 = tpu.matmul %18, %19, %cst_15 {dimension_numbers = #tpu.dot_dimension_numbers<[1], [0], [0], [1], [0, 0, 1, 1], [], []>} : vector<4x32xbf16>, vector<32x8xbf16>, vector<4x8xf32> -> vector<4x8xf32>
    %c0_16 = arith.constant 0 : index
    %c0_17 = arith.constant 0 : index
    %21 = vector.load %arg8[%c0_16, %c0_17] : memref<4x1xf32, #tpu.memory_space<vmem>>, vector<4x1xf32>
    %22 = vector.broadcast %21 : vector<4x1xf32> to vector<4x8xf32>
    %23 = arith.addf %20, %22 : vector<4x8xf32>
    %24 = math.tanh %23 : vector<4x8xf32>
    %25 = vector.broadcast %0 : f32 to vector<4x8xf32>
    %26 = arith.mulf %25, %24 : vector<4x8xf32>
    %c0_18 = arith.constant 0 : index
    %c0_19 = arith.constant 0 : index
    %27 = vector.load %arg9[%c0_18, %c0_19] : memref<4x8xf32, #tpu.memory_space<vmem>>, vector<4x8xf32>
    tpu.vector_store %arg9[%c0_18, %c0_19], %26 {strides = array<i32>} : memref<4x8xf32, #tpu.memory_space<vmem>>, vector<4x8xf32>,
    return
  }
  func.func @transform_0(%arg0: i32) -> i32 {
    %c0_i32 = arith.constant 0 : i32
    %c0_i32_0 = arith.constant 0 : i32
    return %c0_i32 : i32
  }
  func.func @transform_1(%arg0: i32) -> (i32, i32) {
    %c0_i32 = arith.constant 0 : i32
    %c0_i32_0 = arith.constant 0 : i32
    return %c0_i32, %arg0 : i32, i32
  }
  func.func @transform_2(%arg0: i32) -> (i32, i32) {
    %c0_i32 = arith.constant 0 : i32
    %c0_i32_0 = arith.constant 0 : i32
    %c0_i32_1 = arith.constant 0 : i32
    return %c0_i32, %c0_i32_0 : i32, i32
  }
  func.func @transform_3(%arg0: i32) -> (i32, i32) {
    %c0_i32 = arith.constant 0 : i32
    %c0_i32_0 = arith.constant 0 : i32
    %c0_i32_1 = arith.constant 0 : i32
    return %c0_i32, %c0_i32_0 : i32, i32
  }
  func.func @transform_4(%arg0: i32) -> (i32, i32) {
    %c0_i32 = arith.constant 0 : i32
    %c0_i32_0 = arith.constant 0 : i32
    %c0_i32_1 = arith.constant 0 : i32
    return %c0_i32, %c0_i32_0 : i32, i32
  }
  func.func @transform_5(%arg0: i32) -> (i32, i32) {
    %c0_i32 = arith.constant 0 : i32
    %c0_i32_0 = arith.constant 0 : i32
    %c0_i32_1 = arith.constant 0 : i32
    return %c0_i32, %c0_i32_0 : i32, i32
  }
  func.func @transform_6(%arg0: i32) -> (i32, i32) {
    %c0_i32 = arith.constant 0 : i32
    %c0_i32_0 = arith.constant 0 : i32
    %c0_i32_1 = arith.constant 0 : i32
    return %c0_i32, %c0_i32_0 : i32, i32
  }
  func.func @transform_7(%arg0: i32) -> (i32, i32) {
    %c0_i32 = arith.constant 0 : i32
    %c0_i32_0 = arith.constant 0 : i32
    %c0_i32_1 = arith.constant 0 : i32
    return %c0_i32, %c0_i32_0 : i32, i32
  }
  func.func @transform_8(%arg0: i32) -> (i32, i32) {
    %c0_i32 = arith.constant 0 : i32
    %c0_i32_0 = arith.constant 0 : i32
    return %c0_i32, %arg0 : i32, i32
  }
}

</mosaic_0001>

<bundles_post_ra>
// kernel: actor_forward.1
= control target key start
LH: loop header
LB: loop body
LE: loop exit
PB: predicated region body
PF: predicated region fallthrough
CT: control target
= control target key end

     0   :  { %vm74_vm0 = vcmask 130048   ;;  %v382_v4 = vmov 0   ;;  %s499_s0 = inlined_call_operand.<no memory space> [shape: f32[1], index: 0, kind: input, shape index: {}]   ;;  %s500_s1 = inlined_call_operand.vmem [shape: f32[16,8], index: 1, kind: input, shape index: {}]   ;;  %s501_s2 = inlined_call_operand.vmem [shape: bf16[32,16], index: 2, kind: input, shape index: {}]   ;;  %s502_s3 = inlined_call_operand.vmem [shape: bf16[32,32], index: 3, kind: input, shape index: {}]   ;;  %s503_s4 = inlined_call_operand.vmem [shape: bf16[4,32], index: 4, kind: input, shape index: {}]   ;;  %s504_s5 = inlined_call_operand.vmem [shape: f32[32,1], index: 5, kind: input, shape index: {}]   ;;  %s505_s6 = inlined_call_operand.vmem [shape: f32[32,1], index: 6, kind: input, shape index: {}]   ;;  %s506_s7 = inlined_call_operand.vmem [shape: f32[4,1], index: 7, kind: input, shape index: {}]   ;;  %s507_s8 = inlined_call_operand.hbm [shape: f32[4,8], index: 8, kind: output, shape index: {}]  }
   0x1   :  { %v33_v0 = vld [vmem:[%s500_s1] sm:$0xff]  ;;  %v34_v1 = vld [vmem:[%s500_s1 + $0x8] sm:$0xff]  ;;  %350 = vset.pattern.permute.xlu0 %v382_v4  ;;  %351 = vset.pattern.permute.xlu1 %v382_v4  ;;  %v42_v7 = vld [vmem:[%s504_s5 + $0x10] sm:$0xff] }
   0x2   :  { %v35_v2 = vpack.c.bf16 %v34_v1, %v33_v0  ;;  %v352_v3 = vld [vmem:[%s501_s2] sm:$0xff]   ;;  %v353_v6 = vld [vmem:[%s501_s2 + $0x8] sm:$0xff]   ;;  %56 = vperm.xlu1 %351, %v42_v7   ;;  %v43_v9 = vld [vmem:[%s504_s5 + $0x18] sm:$0xff] }
   0x3   :  { %v40_v5 = vld [vmem:[%s504_s5] sm:$0xff]  ;;  %326 = vmatprep.mubr.msk.bf16.mxu0 %vm74_vm0, %v352_v3  ;;  %v41_v8 = vld [vmem:[%s504_s5 + $0x8] sm:$0xff] }
   0x4   :  { %324 = vmatprep.subr.bf16.mxu0 %v35_v2  ;;  %46 = vperm.xlu0 %350, %v40_v5  }
   0x5   :  { %325 = vmatpush3.bf16.msra.mxu0 %v35_v2 }
   0x8   :  { %327 = vmatmul.mubr.msk.bf16.vlgmr.msra.gmra.mrb[0].mxu0 %vm74_vm0, %v353_v6 }
   0x9   :  { %14 = vsyncpa [#allocation4], 0  ;;  %51 = vperm.xlu0 %350, %v41_v8   ;;  %v140_v10 = vld [vmem:[%s505_s6] sm:$0xff]  ;;  %61 = vperm.xlu1 %351, %v43_v9   ;;  %v141_v11 = vld [vmem:[%s505_s6 + $0x8] sm:$0xff]  ;;  %vm174_vm1 = vcmask 261120   ;;  %v383_v35 = vmov 0.0   ;;  %v287_v61 = vstv %s499_s0 }
   0xa   :  { %v142_v12 = vld [vmem:[%s505_s6 + $0x10] sm:$0xff]  ;;  %v143_v13 = vld [vmem:[%s505_s6 + $0x18] sm:$0xff]  ;;  %v237_v14 = vld [vmem:[%s506_s7] sm:$0xf]  ;;  %338 = vmatprep.subr.bf16.mxu0 %v383_v35  ;;  %vm384_vm2 = vmmov 0   ;;  %s385_s11 = smov [#allocation3]  }
   0xb   :  { %v354_v15 = vld [vmem:[%s502_s3] sm:$0xff]   ;;  %v355_v34 = vld [vmem:[%s502_s3 + $0x8] sm:$0xff]   ;;  %342 = vmatprep.mubr.msk.bf16.mxu0 %vm384_vm2, %v383_v35  ;;  %s297_s12 = sshll.u32 %s385_s11, 4  ;;  %vm289_vm3 = vcmask 60416   ;;  %s298_s12 = int_to_ptr.vmem [resolvable:$true] %s297_s12 }
   0xc   :  { %334 = vmatprep.mubr.msk.bf16.mxu1 %vm174_vm1, %v354_v15  ;;  %v234_v54 = vld [vmem:[%s503_s4] sm:$0x3]  ;;  %s358_s4 = scalar_lea.vmem %s298_s12, 64  ;;  %p363_p1 = scmp.lt.s32.totalorder %s298_s12, %s298_s12 }
   0xd   :  { %146 = vperm.xlu0 %350, %v140_v10   ;;  %151 = vperm.xlu1 %351, %v141_v11   ;;  %p359_p0 = scmp.ne.s32.totalorder %s298_s12, %s358_s4  ;;  %p364_p2 = scmp.lt.s32.totalorder %s358_s4, %s358_s4 }
   0xf   :  { %p365_p3 = por %p364_p2, %p363_p1 }
  0x11   :  { %156 = vperm.xlu0 %350, %v142_v12   ;;  %161 = vperm.xlu1 %351, %v143_v13   ;;  %p366_p4 = pnand %p365_p3, %p359_p0 }
  0x15   :  { %240 = vperm.xlu0 %350, %v237_v14  }
  0x81   :  { %v57_v16 = vpop.permute.xlu1 %56 }
  0x83   :  { %v47_v17 = vpop.permute.xlu0 %46 }
  0x88   :  { %v62_v21 = vpop.permute.xlu1 %61  ;;  %v52_v24 = vpop.permute.xlu0 %51 }
  0x8c   :  { %v147_v36 = vpop.permute.xlu0 %146  ;;  %v152_v37 = vpop.permute.xlu1 %151 }
  0x90   :  { %v157_v38 = vpop.permute.xlu0 %156  ;;  %v162_v42 = vpop.permute.xlu1 %161 }
  0x94   :  { %v241_v55 = vpop.permute.xlu0 %240 }
  0xdb   :  { %v328_v18 = vpop.f32.mrb[0].mxu0 }
  0xdc   :  { %v124_v19 = vadd.f32 %v328_v18, %v57_v16  ;;  %v115_v20 = vpop.f32.mrb[1].mxu0 }
  0xdd   :  { %v116_v22 = vadd.f32 %v115_v20, %v47_v17  ;;  %v329_v23 = vpop.f32.mrb[2].mxu0 }
  0xde   :  { %v127_v25 = vadd.f32 %v329_v23, %v62_v21  ;;  %v118_v26 = vpop.f32.mrb[3].mxu0  ;;  %v132_v28 = vmax.f32 %v124_v19, 0.0 }
  0xdf   :  { %v119_v27 = vadd.f32 %v118_v26, %v52_v24  ;;  %v130_v30 = vmax.f32 %v116_v22, 0.0 }
  0xe0   :  { %v133_v29 = vmax.f32 %v127_v25, 0.0 }
  0xe1   :  { %v131_v31 = vmax.f32 %v119_v27, 0.0 }
  0xe2   :  { %v139_v32 = vpack.c.bf16 %v133_v29, %v132_v28 }
  0xe3   :  { %v138_v33 = vpack.c.bf16 %v131_v31, %v130_v30 }
  0xe5   :  { %330 = vmatprep.subr.bf16.mxu1 %v138_v33 }
  0xe6   :  { %331 = vmatpush3.bf16.msra.mxu1 %v138_v33 }
  0xe7   :  { %332 = vmatprep.subr.bf16.mxu1 %v139_v32 }
  0xea   :  { %333 = vmatpush3.bf16.msra.mxu1 %v139_v32 }
  0xed   :  { %335 = vmatmul.mubr.msk.bf16.vlgmr.msra.gmra.mrb[0].mxu1 %vm174_vm1, %v355_v34 }
 0x1c0   :  { %v336_v39 = vpop.f32.mrb[0].mxu1 }
 0x1c1   :  { %v224_v40 = vadd.f32 %v336_v39, %v157_v38  ;;  %v215_v41 = vpop.f32.mrb[1].mxu1 }
 0x1c2   :  { %v216_v43 = vadd.f32 %v215_v41, %v147_v36  ;;  %v337_v44 = vpop.f32.mrb[2].mxu1 }
 0x1c3   :  { %v227_v45 = vadd.f32 %v337_v44, %v162_v42  ;;  %v218_v46 = vpop.f32.mrb[3].mxu1  ;;  %v232_v48 = vmax.f32 %v224_v40, 0.0 }
 0x1c4   :  { %v219_v47 = vadd.f32 %v218_v46, %v152_v37  ;;  %v230_v50 = vmax.f32 %v216_v43, 0.0 }
 0x1c5   :  { %v233_v49 = vmax.f32 %v227_v45, 0.0 }
 0x1c6   :  { %v231_v51 = vmax.f32 %v219_v47, 0.0 }
 0x1c7   :  { %v236_v52 = vpack.c.bf16 %v233_v49, %v232_v48 }
 0x1c8   :  { %v235_v53 = vpack.c.bf16 %v231_v51, %v230_v50 }
 0x1ca   :  { %339 = vmatpush3.bf16.msra.mxu0 %v235_v53 }
 0x1cb   :  { %340 = vmatprep.subr.bf16.mxu0 %v383_v35 }
 0x1ce   :  { %341 = vmatpush3.bf16.msra.mxu0 %v236_v52 }
 0x1d1   :  { %343 = vmatmul.mubr.msk.bf16.vlgmr.msra.gmra.mrb[4].mxu0 %vm174_vm1, %v234_v54 }
 0x2a4   :  { %v280_v56 = vpop.f32.mrb[4].mxu0 }
 0x2a5   :  { %v281_v57 = vadd.f32 %v280_v56, %v241_v55  ;;  %v344_v58 = vpop.f32.mrb[5].mxu0 }
 0x2a6   :  { %v283_v59 = vpop.f32.mrb[6].mxu0 }
 0x2a7   :  { %356 = vtanh.f32 %v281_v57  ;;  %v345_v60 = vpop.f32.mrb[7].mxu0 }
 0x2b1   :  { %v357_v62 = vpop.eup %356 }
 0x2b2   :  { %v288_v63 = vmul.f32 %v357_v62, %v287_v61 }
 0x2b4   :  { %290 = vst.msk [vmem:[#allocation3] sm:$0xf] %vm289_vm3, %v288_v63 }
 0x2b5   :  { %369 = shalt.err (!%p366_p4)
}
 0x2b6   :  { %s370_s1 = scalar_lea.hbm %s507_s8, 64 }
 0x2b7   :  { %p371_p5 = scmp.ne.s32.totalorder %s507_s8, %s370_s1  ;;  %p374_p6 = scmp.lt.u32.totalorder %s370_s1, %s507_s8 }
 0x2b9   :  { %p376_p7 = pnand %p374_p6, %p371_p5 }
 0x2bb   :  { %379 = shalt.err (!%p376_p7)
}
 0x2bc   :  { %300 = dma.vmem_to_hbm [thread:$0]  %s298_s12, 64, %s507_s8, [#allocation4]  }
 0x2bd   :  { %380 = dma.done.wait [#allocation4], 64  }
 0x2be   :  { %381 = vsyncadd [#allocation4], 4294967232 }
 0x2bf   :  { %304 = vsyncpa [#allocation4], 1 }

</bundles_post_ra>
